<compile_context>
chip_gen: v7x
topology: tpu7x:2x2x1
jax: 0.10.0
libtpu: 0.0.40
codegen_flags: <defaults>
</compile_context>

<pallas_src>
import math

import jax
import jax.numpy as jnp
from jax.experimental import pallas as pl
from jax.experimental.pallas import tpu as pltpu

BN_EPS = 1e-5


def srrl_kernel(x_ref, wt_ref, gamma_ref, beta_ref, wc_ref, bc_ref,
                trans_ref, pred_ref, y_ref):
    j = pl.program_id(0)

    # ---- transfer branch: conv1x1 + BN(train) + ReLU, computed once -----
    @pl.when(j == 0)
    def _():
        # conv1x1 (bias-free) == matmul; native-dtype operands on the MXU,
        # f32 accumulation.
        z = jnp.dot(x_ref[...], wt_ref[...],
                    preferred_element_type=jnp.float32)        # (B, t_n) f32

        # One-pass batch statistics (biased variance), f32 accumulation.
        inv_b = jnp.float32(1.0 / z.shape[0])
        s1 = jnp.sum(z, axis=0, keepdims=True)                 # (1, t_n)
        s2 = jnp.sum(z * z, axis=0, keepdims=True)             # (1, t_n)
        mean = s1 * inv_b
        var = s2 * inv_b - mean * mean

        # Fold BN into a single scale/shift FMA; rsqrt runs on the EUP.
        gamma = gamma_ref[...].astype(jnp.float32)
        beta = beta_ref[...].astype(jnp.float32)
        scale = gamma * jax.lax.rsqrt(var + BN_EPS)
        shift = beta - mean * scale
        y = jnp.maximum(z * scale + shift, 0.0)                # (B, t_n) f32

        y_ref[...] = y                                         # persists across j
        trans_ref[...] = y.astype(trans_ref.dtype)

    # ---- teacher classifier tile: (B, t_n) @ (t_n, tile_n) + bias -------
    # Feed the MXU with the weight's dtype (bf16 stays on the fast path).
    y_op = y_ref[...].astype(wc_ref.dtype)
    pred = jnp.dot(y_op, wc_ref[...], preferred_element_type=jnp.float32)
    pred = pred + bc_ref[...].astype(jnp.float32)
    pred_ref[...] = pred.astype(pred_ref.dtype)


def _choose_cls_tile(n_cls, target=512):
    """Lane-dense classifier-column tile that evenly divides n_cls."""
    if n_cls <= target:
        return n_cls
    for t in range(target, 127, -128):
        if n_cls % t == 0:
            return t
    return n_cls  # fallback: single full-width block


def srrl_forward(feat_s, w_transfer, bn_gamma, bn_beta, w_cls, b_cls,
                 *, cls_tile_target=512):
    B, s_n = feat_s.shape
    t_n = w_transfer.shape[1]
    n_cls = w_cls.shape[1]

    tile_n = _choose_cls_tile(n_cls, cls_tile_target)
    num_tiles = n_cls // tile_n

    # VMEM budget: resident x / W_t / gamma / beta / trans / y-scratch, plus
    # double-buffered streamed W_c / bias / pred tiles.  Capped well below
    # v7x's 64 MiB physical VMEM.
    in_b = jnp.dtype(feat_s.dtype).itemsize
    w_b = jnp.dtype(w_cls.dtype).itemsize
    vmem_bytes = (
        B * s_n * in_b                      # feat_s
        + s_n * t_n * w_b                   # W_t
        + 2 * t_n * 4                       # gamma / beta
        + 2 * (t_n * tile_n + tile_n) * w_b  # W_c + bias tiles, double-buffered
        + B * t_n * in_b                    # trans output
        + 2 * B * tile_n * in_b             # pred tiles, double-buffered
        + B * t_n * 4                       # f32 y scratch
    )
    vmem_limit = int(min(max(2 * vmem_bytes, 16 * 1024 * 1024),
                         48 * 1024 * 1024))

    # NOTE: the n_cls axis must stay "arbitrary" because the y scratch is
    # initialized only at j == 0 and reused by later steps; a "parallel"
    # (megacore) split would leave the second core without the scratch.
    # TODO(synk): for v7x megacore, recompute conv+BN per tile to allow a
    # "parallel" axis when n_cls is very large.
    return pl.pallas_call(
        srrl_kernel,
        grid=(num_tiles,),
        out_shape=(jax.ShapeDtypeStruct((B, t_n), feat_s.dtype),
                   jax.ShapeDtypeStruct((B, n_cls), feat_s.dtype)),
        in_specs=[
            pl.BlockSpec((B, s_n), lambda j: (0, 0)),      # feat_s (resident)
            pl.BlockSpec((s_n, t_n), lambda j: (0, 0)),    # conv1x1 weight^T
            pl.BlockSpec((1, t_n), lambda j: (0, 0)),      # BN gamma
            pl.BlockSpec((1, t_n), lambda j: (0, 0)),      # BN beta
            pl.BlockSpec((t_n, tile_n), lambda j: (0, j)),  # W_c tile (streamed)
            pl.BlockSpec((1, tile_n), lambda j: (0, j)),    # bias tile
        ],
        out_specs=(
            pl.BlockSpec((B, t_n), lambda j: (0, 0)),       # trans (resident)
            pl.BlockSpec((B, tile_n), lambda j: (0, j)),    # pred tile
        ),
        scratch_shapes=[pltpu.VMEM((B, t_n), jnp.float32)],  # y (post-ReLU)
        compiler_params=pltpu.CompilerParams(
            dimension_semantics=("arbitrary",),
            vmem_limit_bytes=vmem_limit),
    )(feat_s, w_transfer, bn_gamma, bn_beta, w_cls, b_cls)


def srrl_reference(feat_s, w_transfer, bn_gamma, bn_beta, w_cls, b_cls):
    """Pure-JAX reference for a correctness check."""
    z = feat_s.astype(jnp.float32) @ w_transfer.astype(jnp.float32)
    mean = jnp.mean(z, axis=0, keepdims=True)
    var = jnp.mean(jnp.square(z - mean), axis=0, keepdims=True)
    y = (z - mean) / jnp.sqrt(var + BN_EPS)
    y = jnp.maximum(y * bn_gamma + bn_beta, 0.0)
    return y, y @ w_cls + b_cls


if __name__ == "__main__":
    # Small shapes consistent with the module: s_n -> t_n -> num_classes.
    # n_cls = 1024 with a 512-wide tile exercises the streamed classifier
    # path (grid of 2 steps) while staying tiny.
    B, s_n, t_n, n_cls = 8, 64, 128, 1024

    key = jax.random.PRNGKey(0)
    k1, k2, k3, k4, k5, k6 = jax.random.split(key, 6)

    feat_s = jax.random.normal(k1, (B, s_n), jnp.float32)

    # Conv1x1 weight (t_n, s_n, 1, 1) in torch, stored here as (s_n, t_n).
    w_transfer = jax.random.normal(k2, (s_n, t_n), jnp.float32) / math.sqrt(s_n)
    bn_gamma = 1.0 + 0.1 * jax.random.normal(k3, (1, t_n), jnp.float32)
    bn_beta = 0.1 * jax.random.normal(k4, (1, t_n), jnp.float32)
    # cls_t is the teacher classifier passed into forward(); modeled as
    # Linear(t_n, n_cls), weight stored transposed as (t_n, n_cls).
    w_cls = jax.random.normal(k5, (t_n, n_cls), jnp.float32) / math.sqrt(t_n)
    b_cls = 0.01 * jax.random.normal(k6, (1, n_cls), jnp.float32)

    trans_feat_s, pred_feat_s = srrl_forward(
        feat_s, w_transfer, bn_gamma, bn_beta, w_cls, b_cls)
    jax.block_until_ready((trans_feat_s, pred_feat_s))

    ref_trans, ref_pred = srrl_reference(
        feat_s, w_transfer, bn_gamma, bn_beta, w_cls, b_cls)
    assert jnp.allclose(trans_feat_s, ref_trans, atol=1e-4, rtol=1e-4), \
        "trans_feat_s mismatch"
    assert jnp.allclose(pred_feat_s, ref_pred, atol=1e-4, rtol=1e-4), \
        "pred_feat_s mismatch"

    print("KERNEL_OK")
</pallas_src>

<mosaic_0001>
module attributes {stable_mosaic.version = 11 : i64} {
  func.func @srrl_kernel(%arg0: i32, %arg1: memref<8x64xf32, #tpu.memory_space<vmem>>, %arg2: memref<64x128xf32, #tpu.memory_space<vmem>>, %arg3: memref<1x128xf32, #tpu.memory_space<vmem>>, %arg4: memref<1x128xf32, #tpu.memory_space<vmem>>, %arg5: memref<128x512xf32, #tpu.memory_space<vmem>>, %arg6: memref<1x512xf32, #tpu.memory_space<vmem>>, %arg7: memref<8x128xf32, #tpu.memory_space<vmem>>, %arg8: memref<8x512xf32, #tpu.memory_space<vmem>>, %arg9: memref<8x128xf32, #tpu.memory_space<vmem>>) attributes {dimension_semantics = [#tpu.dimension_semantics<arbitrary>], iteration_bounds = array<i64: 2>, scalar_prefetch = 0 : i64, scratch_operands = 1 : i64, tpu.core_type = #tpu.core_type<tc>, window_params = [{pipeline_mode = #tpu.pipeline_mode<synchronous>, transform_indices = @transform_0, window_bounds = array<i64: 8, 64>}, {pipeline_mode = #tpu.pipeline_mode<synchronous>, transform_indices = @transform_1, window_bounds = array<i64: 64, 128>}, {pipeline_mode = #tpu.pipeline_mode<synchronous>, transform_indices = @transform_2, window_bounds = array<i64: 1, 128>}, {pipeline_mode = #tpu.pipeline_mode<synchronous>, transform_indices = @transform_3, window_bounds = array<i64: 1, 128>}, {transform_indices = @transform_4, window_bounds = array<i64: 128, 512>}, {transform_indices = @transform_5, window_bounds = array<i64: 1, 512>}, {pipeline_mode = #tpu.pipeline_mode<synchronous>, transform_indices = @transform_6, window_bounds = array<i64: 8, 128>}, {transform_indices = @transform_7, window_bounds = array<i64: 8, 512>}]} {
    %c0_i32 = arith.constant 0 : i32
    %0 = arith.cmpi eq, %arg0, %c0_i32 : i32
    %1 = arith.extui %0 : i1 to i32
    %c0_i32_0 = arith.constant 0 : i32
    %2 = arith.cmpi ne, %1, %c0_i32_0 : i32
    scf.if %2 {
      %c0_8 = arith.constant 0 : index
      %c0_9 = arith.constant 0 : index
      %10 = vector.load %arg1[%c0_8, %c0_9] : memref<8x64xf32, #tpu.memory_space<vmem>>, vector<8x64xf32>
      %c0_10 = arith.constant 0 : index
      %c0_11 = arith.constant 0 : index
      %11 = vector.load %arg2[%c0_10, %c0_11] : memref<64x128xf32, #tpu.memory_space<vmem>>, vector<64x128xf32>
      %cst_12 = arith.constant dense<0.000000e+00> : vector<8x128xf32>
      %12 = tpu.matmul %10, %11, %cst_12 {dimension_numbers = #tpu.dot_dimension_numbers<[1], [0], [0], [1], [0, 0, 1, 1], [], []>} : vector<8x64xf32>, vector<64x128xf32>, vector<8x128xf32> -> vector<8x128xf32>
      %cst_13 = arith.constant dense<0.000000e+00> : vector<128xf32>
      %13 = vector.multi_reduction <add>, %12, %cst_13 [0] : vector<8x128xf32> to vector<128xf32>
      %14 = vector.shape_cast %13 : vector<128xf32> to vector<1x128xf32>
      %15 = arith.mulf %12, %12 : vector<8x128xf32>
      %cst_14 = arith.constant dense<0.000000e+00> : vector<128xf32>
      %16 = vector.multi_reduction <add>, %15, %cst_14 [0] : vector<8x128xf32> to vector<128xf32>
      %17 = vector.shape_cast %16 : vector<128xf32> to vector<1x128xf32>
      %cst_15 = arith.constant 1.250000e-01 : f32
      %18 = vector.broadcast %cst_15 : f32 to vector<1x128xf32>
      %19 = arith.mulf %14, %18 : vector<1x128xf32>
      %cst_16 = arith.constant 1.250000e-01 : f32
      %20 = vector.broadcast %cst_16 : f32 to vector<1x128xf32>
      %21 = arith.mulf %17, %20 : vector<1x128xf32>
      %22 = arith.mulf %19, %19 : vector<1x128xf32>
      %23 = arith.subf %21, %22 : vector<1x128xf32>
      %c0_17 = arith.constant 0 : index
      %c0_18 = arith.constant 0 : index
      %24 = vector.load %arg3[%c0_17, %c0_18] : memref<1x128xf32, #tpu.memory_space<vmem>>, vector<1x128xf32>
      %c0_19 = arith.constant 0 : index
      %c0_20 = arith.constant 0 : index
      %25 = vector.load %arg4[%c0_19, %c0_20] : memref<1x128xf32, #tpu.memory_space<vmem>>, vector<1x128xf32>
      %cst_21 = arith.constant 9.99999974E-6 : f32
      %26 = vector.broadcast %cst_21 : f32 to vector<1x128xf32>
      %27 = arith.addf %23, %26 : vector<1x128xf32>
      %28 = math.rsqrt %27 : vector<1x128xf32>
      %29 = arith.mulf %24, %28 : vector<1x128xf32>
      %30 = arith.mulf %19, %29 : vector<1x128xf32>
      %31 = arith.subf %25, %30 : vector<1x128xf32>
      %32 = vector.broadcast %29 : vector<1x128xf32> to vector<8x128xf32>
      %33 = arith.mulf %12, %32 : vector<8x128xf32>
      %34 = vector.broadcast %31 : vector<1x128xf32> to vector<8x128xf32>
      %35 = arith.addf %33, %34 : vector<8x128xf32>
      %cst_22 = arith.constant 0.000000e+00 : f32
      %36 = vector.broadcast %cst_22 : f32 to vector<8x128xf32>
      %37 = arith.maximumf %35, %36 : vector<8x128xf32>
      %c0_23 = arith.constant 0 : index
      %c0_24 = arith.constant 0 : index
      %38 = vector.load %arg9[%c0_23, %c0_24] : memref<8x128xf32, #tpu.memory_space<vmem>>, vector<8x128xf32>
      tpu.vector_store %arg9[%c0_23, %c0_24], %37 {strides = array<i32>} : memref<8x128xf32, #tpu.memory_space<vmem>>, vector<8x128xf32>,
      %c0_25 = arith.constant 0 : index
      %c0_26 = arith.constant 0 : index
      %39 = vector.load %arg7[%c0_25, %c0_26] : memref<8x128xf32, #tpu.memory_space<vmem>>, vector<8x128xf32>
      tpu.vector_store %arg7[%c0_25, %c0_26], %37 {strides = array<i32>} : memref<8x128xf32, #tpu.memory_space<vmem>>, vector<8x128xf32>,
    } else {
    }
    %c0 = arith.constant 0 : index
    %c0_1 = arith.constant 0 : index
    %3 = vector.load %arg9[%c0, %c0_1] : memref<8x128xf32, #tpu.memory_space<vmem>>, vector<8x128xf32>
    %c0_2 = arith.constant 0 : index
    %c0_3 = arith.constant 0 : index
    %4 = vector.load %arg5[%c0_2, %c0_3] : memref<128x512xf32, #tpu.memory_space<vmem>>, vector<128x512xf32>
    %cst = arith.constant dense<0.000000e+00> : vector<8x512xf32>
    %5 = tpu.matmul %3, %4, %cst {dimension_numbers = #tpu.dot_dimension_numbers<[1], [0], [0], [1], [0, 0, 1, 1], [], []>} : vector<8x128xf32>, vector<128x512xf32>, vector<8x512xf32> -> vector<8x512xf32>
    %c0_4 = arith.constant 0 : index
    %c0_5 = arith.constant 0 : index
    %6 = vector.load %arg6[%c0_4, %c0_5] : memref<1x512xf32, #tpu.memory_space<vmem>>, vector<1x512xf32>
    %7 = vector.broadcast %6 : vector<1x512xf32> to vector<8x512xf32>
    %8 = arith.addf %5, %7 : vector<8x512xf32>
    %c0_6 = arith.constant 0 : index
    %c0_7 = arith.constant 0 : index
    %9 = vector.load %arg8[%c0_6, %c0_7] : memref<8x512xf32, #tpu.memory_space<vmem>>, vector<8x512xf32>
    tpu.vector_store %arg8[%c0_6, %c0_7], %8 {strides = array<i32>} : memref<8x512xf32, #tpu.memory_space<vmem>>, vector<8x512xf32>,
    return
  }
  func.func @transform_0(%arg0: i32) -> (i32, i32) {
    %c0_i32 = arith.constant 0 : i32
    %c0_i32_0 = arith.constant 0 : i32
    %c0_i32_1 = arith.constant 0 : i32
    return %c0_i32, %c0_i32_0 : i32, i32
  }
  func.func @transform_1(%arg0: i32) -> (i32, i32) {
    %c0_i32 = arith.constant 0 : i32
    %c0_i32_0 = arith.constant 0 : i32
    %c0_i32_1 = arith.constant 0 : i32
    return %c0_i32, %c0_i32_0 : i32, i32
  }
  func.func @transform_2(%arg0: i32) -> (i32, i32) {
    %c0_i32 = arith.constant 0 : i32
    %c0_i32_0 = arith.constant 0 : i32
    %c0_i32_1 = arith.constant 0 : i32
    return %c0_i32, %c0_i32_0 : i32, i32
  }
  func.func @transform_3(%arg0: i32) -> (i32, i32) {
    %c0_i32 = arith.constant 0 : i32
    %c0_i32_0 = arith.constant 0 : i32
    %c0_i32_1 = arith.constant 0 : i32
    return %c0_i32, %c0_i32_0 : i32, i32
  }
  func.func @transform_4(%arg0: i32) -> (i32, i32) {
    %c0_i32 = arith.constant 0 : i32
    %c0_i32_0 = arith.constant 0 : i32
    return %c0_i32, %arg0 : i32, i32
  }
  func.func @transform_5(%arg0: i32) -> (i32, i32) {
    %c0_i32 = arith.constant 0 : i32
    %c0_i32_0 = arith.constant 0 : i32
    return %c0_i32, %arg0 : i32, i32
  }
  func.func @transform_6(%arg0: i32) -> (i32, i32) {
    %c0_i32 = arith.constant 0 : i32
    %c0_i32_0 = arith.constant 0 : i32
    %c0_i32_1 = arith.constant 0 : i32
    return %c0_i32, %c0_i32_0 : i32, i32
  }
  func.func @transform_7(%arg0: i32) -> (i32, i32) {
    %c0_i32 = arith.constant 0 : i32
    %c0_i32_0 = arith.constant 0 : i32
    return %c0_i32, %arg0 : i32, i32
  }
}

</mosaic_0001>

<bundles_post_ra>
// kernel: tpu_custom_call.1
= control target key start
LH: loop header
LB: loop body
LE: loop exit
PB: predicated region body
PF: predicated region fallthrough
CT: control target
= control target key end

     0   :  { %s1653_s0 = inlined_call_operand.hbm [shape: f32[8,64], index: 0, kind: input, shape index: {}]   ;;  %s1654_s1 = inlined_call_operand.hbm [shape: f32[64,128], index: 1, kind: input, shape index: {}]   ;;  %s1655_s2 = inlined_call_operand.vmem [shape: f32[1,128], index: 2, kind: input, shape index: {}]   ;;  %s1656_s3 = inlined_call_operand.vmem [shape: f32[1,128], index: 3, kind: input, shape index: {}]   ;;  %s1657_s4 = inlined_call_operand.hbm [shape: f32[128,1024], index: 4, kind: input, shape index: {}]   ;;  %s1658_s5 = inlined_call_operand.vmem [shape: f32[1,1024], index: 5, kind: input, shape index: {}]   ;;  %s1659_s6 = inlined_call_operand.hbm [shape: f32[8,128], index: 6, kind: output, shape index: {0}]   ;;  %s1660_s7 = inlined_call_operand.hbm [shape: f32[8,1024], index: 7, kind: output, shape index: {1}]  }
   0x1   :  { %1670 = sst [smem:[#allocation20_spill]] %s1653_s0 }
   0x2   :  { %13 = vsyncpa [#allocation4], 0 }
   0x3   :  { %14 = vsyncpa [#allocation7], 0 }
   0x4   :  { %15 = vsyncpa [#allocation5], 0 }
   0x5   :  { %16 = vsyncpa [#allocation11], 0 }
   0x6   :  { %18 = vsyncpa [#allocation11 + $0x1], 0  ;;  %s1300_s24 = smov 0   ;;  %s1302_s25 = smov 0  }
   0x7   :  { %s1304_s26 = smov 0   ;;  %s1306_s27 = smov 0  }
   0x8 LB: > { %s1321_s28 = sadd.s32 4294967295, %s1244_s27   ;;  %s840_s29 = sadd.s32 4294967294, %s1244_s27   ;;  %s1244_s27 = sphi %s1306_s27, %s1700_s27   ;;  %s1240_s26 = sphi %s1304_s26, %s1704_s26   ;;  %s1236_s25 = sphi %s1302_s25, %s1703_s25   ;;  %s1232_s24 = sphi %s1300_s24, %s1702_s24  }
   0x9   : > { %s1325_s30 = sadd.s32 1, %s1244_s27   ;;  %s115_s8 = sadd.s32 1, %s1240_s26 }
   0xa   : > { %1671 = sst [smem:[#allocation17_spill]] %s1325_s30  ;;  %s112_s9 = ssub.s32 %s1244_s27, %s1325_s30 }
   0xb   : > { %p122_p0 = scmp.ne.s32.totalorder %s1240_s26, %s1236_s25  ;;  %p113_p1 = scmp.eq.s32.totalorder %s112_s9, 0 }
   0xc   : > { %p123_p2 = scmp.eq.s32.totalorder %s1244_s27, 0  ;;  %p128_p3 = scmp.ne.s32.totalorder %s1236_s25, %s1232_s24 }
   0xd   : > { %p1661_p4 = scmp.eq.s32.totalorder %s1321_s28, 0  ;;  %p1662_p7 = scmp.eq.s32.totalorder %s1321_s28, 1 }
   0xe   : > { %s1337_s10 = scalar_select %p113_p1, %s1240_s26, %s115_s8  }
   0xf   : > { %p1339_p5 = por %p123_p2, %p122_p0  ;;  %p1345_p6 = por %p1661_p4, %p128_p3 }
  0x10   : > { %1672 = sst [smem:[#allocation18_spill]] %s1337_s10  ;;  %p205_p8 = scmp.eq.s32.totalorder %s840_s29, 1 }
  0x11   : > { %s1674_s12 = scalar_select %p1345_p6, 1, 0 }
  0x12   : > { %p841_p9 = scmp.ge.s32.totalorder %s1244_s27, 1  ;;  %p212_p10 = scmp.lt.s32.totalorder %s1244_s27, 3 }
  0x13   : > { %p1354_p11 = por %p1662_p7, %p122_p0  ;;  %p1358_p12 = por %p205_p8, %p128_p3 }
  0x14   : > { %p1362_p13 = pnand %p841_p9, %p212_p10  ;;  %s1246_s16 = smov [#allocation3]  }
  0x15   : > { %s1675_s13 = scalar_select %p1354_p11, 1, 0 }
  0x16   : > { %s1676_s14 = scalar_select %p1358_p12, 1, 0 }
  0x17   : > { %s1678_s15 = scalar_select %p1362_p13, 1, 0 }
  0x18   : > { %1677 = sst [smem:[#allocation19_spill]] %s1676_s14  ;;  %p985_p4 = pneg %p1362_p13 }
  0x19   : > { %s225_s17 = sshll.u32 %s1246_s16, 4  ;;  %p1002_p0 = scmp.lt.s32.totalorder %s1244_s27, 2  ;;  %s226_s17 = int_to_ptr.vmem [resolvable:$true] %s225_s17 }
  0x1a   : > { %p1679_p7 = scmp.eq.s32.totalorder %s1321_s28, 0  ;;  %s1247_s20 = smov [#allocation6]  }
  0x1b   : > { %p1379_p3 = pnand %p1002_p0, %p1339_p5  ;;  %s235_s21 = sshll.u32 %s1247_s20, 4  ;;  %s1383_s21 = int_to_ptr.vmem [resolvable:$true] %s235_s21 }
  0x1c   : > { %p1373_p6 = pnand %p985_p4, %p1679_p7  ;;  %s1682_s0 = sld [smem:[#allocation20_spill]] }
  0x1d   : > { %s1681_s19 = scalar_select %p1379_p3, 1, 0 }
  0x1e   : > { %p1056_p7 = pneg %p1373_p6 }
  0x22   : > { %s1054_s29 = scalar_lea.hbm %s1682_s0, 128 }
  0x23   : > { %p1055_p4 = scmp.ne.s32.totalorder %s1682_s0, %s1054_s29  ;;  %p1061_p9 = scmp.lt.u32.totalorder %s1054_s29, %s1682_s0 }
  0x25   : > { %p1057_p5 = pnand %p1056_p7, %p1055_p4 }
  0x27   : > { %p1058_p8 = pneg %p1057_p5 }
  0x29   : > { %p1063_p10 = pnand %p1061_p9, %p1058_p8 }
  0x2b   : > { %1066 = shalt.err (!%p1063_p10)
}
  0x2c   : > { %s1067_s20 = scalar_lea.vmem %s226_s17, 128  ;;  %p1075_p12 = scmp.lt.s32.totalorder %s226_s17, %s226_s17 }
  0x2d   : > { %p1068_p0 = scmp.ne.s32.totalorder %s226_s17, %s1067_s20  ;;  %p1076_p11 = scmp.lt.s32.totalorder %s1067_s20, %s1067_s20 }
  0x2f   : > { %p1070_p2 = pnand %p1068_p0, %p1056_p7  ;;  %p1077_p13 = por %p1076_p11, %p1075_p12 }
  0x31   : > { %p1071_p1 = pneg %p1070_p2 }
  0x33   : > { %p1078_p3 = pnand %p1077_p13, %p1071_p1 }
  0x35   : > { %1081 = shalt.err (!%p1078_p3)
}
  0x36   : > { %988 = dma.hbm_to_vmem [thread:$0]  (!%p1373_p6), %s1682_s0, 128, %s226_s17, [#allocation4]  }
  0x37   : > { %s255_s29 = sand.u32 1, %s1244_s27   ;;  %s1082_s11 = scalar_lea.hbm %s1654_s1, 1024 }
  0x38   : > { %p1083_p2 = scmp.ne.s32.totalorder %s1654_s1, %s1082_s11  ;;  %p1089_p13 = scmp.lt.u32.totalorder %s1082_s11, %s1654_s1 }
  0x3a   : > { %p1085_p11 = pnand %p1083_p2, %p1056_p7 }
  0x3c   : > { %p1086_p12 = pneg %p1085_p11 }
  0x3e   : > { %p1091_p1 = pnand %p1089_p13, %p1086_p12 }
  0x40   : > { %1094 = shalt.err (!%p1091_p1)
}
  0x41   : > { %s1095_s17 = scalar_lea.vmem %s1383_s21, 1024  ;;  %p1103_p8 = scmp.lt.s32.totalorder %s1383_s21, %s1383_s21 }
  0x42   : > { %p1096_p3 = scmp.ne.s32.totalorder %s1383_s21, %s1095_s17  ;;  %p1104_p9 = scmp.lt.s32.totalorder %s1095_s17, %s1095_s17 }
  0x44   : > { %p1098_p4 = pnand %p1096_p3, %p1056_p7  ;;  %p1105_p10 = por %p1104_p9, %p1103_p8 }
  0x46   : > { %p1099_p5 = pneg %p1098_p4 }
  0x48   : > { %p1106_p0 = pnand %p1105_p10, %p1099_p5 }
  0x4a   : > { %1109 = shalt.err (!%p1106_p0)
}
  0x4b   : > { %s1248_s30 = smov 128   ;;  %s1249_s10 = smov 8  }
  0x4c   : > { %991 = dma.hbm_to_vmem [thread:$0]  (!%p1373_p6), %s1654_s1, 1024, %s1383_s21, [#allocation7], %s1248_s30, %s1248_s30, %s1249_s10  }
  0x4d   : > { %s257_s8 = sand.u32 1, %s1240_s26   ;;  %s863_s11 = sshll.u32 %s1244_s27, 9 }
  0x4e   : > { %s845_s9 = sshll.u32 %s257_s8, 9  ;;  %s1438_s17 = scalar_lea.hbm %s1657_s4, %s863_s11 }
  0x4f   : > { %s259_s0 = scalar_lea.vmem [#allocation8], %s845_s9  ;;  %s1442_s18 = scalar_lea.sflag [#allocation4], %s255_s29 }
  0x50   : > { %s266_s14 = sshll.u32 %s259_s0, 4  ;;  %s1110_s22 = scalar_lea.hbm %s1438_s17, 8192  ;;  %s1440_s14 = int_to_ptr.vmem [resolvable:$true] %s266_s14 }
  0x51   : > { %p1111_p6 = scmp.ne.s32.totalorder %s1438_s17, %s1110_s22  ;;  %p1683_p7 = scmp.ne.s32.totalorder %s1681_s19, 0 }
  0x52   : > { %s1115_s10 = scalar_lea.hbm %s1657_s4, 16384  ;;  %p1116_p13 = scmp.lt.u32.totalorder %s1438_s17, %s1657_s4 }
  0x53   : > { %p1112_p2 = pneg %p1683_p7  ;;  %p1117_p1 = scmp.lt.u32.totalorder %s1115_s10, %s1110_s22 }
  0x54   : > { %p1119_p4 = scmp.lt.u32.totalorder %s1110_s22, %s1438_s17 }
  0x55   : > { %p1113_p11 = pnand %p1112_p2, %p1111_p6  ;;  %p1118_p3 = por %p1117_p1, %p1116_p13 }
  0x57   : > { %p1114_p12 = pneg %p1113_p11  ;;  %p1120_p5 = por %p1119_p4, %p1118_p3 }
  0x59   : > { %p1121_p8 = pnand %p1120_p5, %p1114_p12 }
  0x5b   : > { %1124 = shalt.err (!%p1121_p8)
}
  0x5c   : > { %s1125_s0 = scalar_lea.vmem %s1440_s14, 8192  ;;  %s1250_s29 = smov [#allocation8]  }
  0x5d   : > { %p1126_p9 = scmp.ne.s32.totalorder %s1440_s14, %s1125_s0  ;;  %s1130_s9 = sshll.u32 %s1250_s29, 4  ;;  %s1131_s9 = int_to_ptr.vmem [resolvable:$false] %s1130_s9 }
  0x5e   : > { %s1132_s11 = scalar_lea.vmem %s1131_s9, 16384  ;;  %p1133_p6 = scmp.lt.s32.totalorder %s1440_s14, %s1131_s9 }
  0x5f   : > { %p1128_p10 = pnand %p1126_p9, %p1112_p2  ;;  %p1134_p11 = scmp.lt.s32.totalorder %s1132_s11, %s1125_s0 }
  0x61   : > { %p1129_p0 = pneg %p1128_p10  ;;  %p1135_p13 = por %p1134_p11, %p1133_p6 }
  0x63   : > { %p1136_p1 = pnand %p1135_p13, %p1129_p0 }
  0x65   : > { %1139 = shalt.err (!%p1136_p1)
}
  0x66   : > { %s1251_s16 = smov 1024   ;;  %s1252_s20 = smov 512  }
  0x67   : > { %s1253_s22 = smov 32   ;;  %p1684_p2 = scmp.ne.s32.totalorder %s1678_s15, 0 }
  0x68   : > { %995 = dma.hbm_to_vmem [thread:$0]  (!%p1683_p7), %s1438_s17, 8192, %s1440_s14, %s1442_s18, %s1251_s16, %s1252_s20, %s1253_s22  }
  0x69   : > { %286 = sbr.rel (%p1684_p2) target bundleno = 670 (0x29e), region = 44  ;;  %p1685_p12 = scmp.eq.s32.totalorder (!%p1684_p2), %s1321_s28, 0 }
  0x70   : > { %1211 = dma.done.wait (%p1685_p12), [#allocation4], 128   ;;  %p1686_p3 = pmov %p1685_p12 }
  0x72   : > { %1213 = vsyncadd (%p1686_p3), [#allocation4], 4294967168  ;;  %p1687_p4 = pmov %p1686_p3 }
  0x73   : > { %p1688_p5 = pmov %p1686_p3 }
  0x74   : > { %1215 = dma.done.wait (%p1687_p4), [#allocation7], 1024  }
  0x75   : > { %1217 = vsyncadd (%p1688_p5), [#allocation7], 4294966272  ;;  %s296_s19 = sand.u32 1, %s1321_s28   ;;  %s1482_s14 = sand.u32 1, %s1236_s25  }
  0x76   : > { %s851_s15 = sshll.u32 %s1482_s14, 9  ;;  %s297_s17 = scalar_lea.sflag [#allocation4], %s296_s19 }
  0x77   : > { %s1485_s18 = scalar_lea.vmem [#allocation8], %s851_s15  ;;  %p1689_p7 = scmp.ne.s32.totalorder %s1674_s12, 0 }
  0x79   : > { %1219 = dma.done.wait (%p1689_p7), %s297_s17, 8192  }
  0x7a   : > { %1221 = vsyncadd (%p1689_p7), %s297_s17, 4294959104  ;;  %s852_s21 = sshll.u32 %s1482_s14, 5  ;;  %s853_s30 = sshll.u32 %s1321_s28, 2 }
  0x7b   : > { %p337_p8 = scmp.lt.s32.totalorder %s853_s30, 7  ;;  %s1499_s0 = scalar_lea.vmem [#allocation10], %s852_s21 }
  0x7c   : > { %p1690_p9 = scmp.ne.s32.totalorder %s1321_s28, 0 }
  0x7d   : > { %s1706_s30 = smov (!%p337_p8, %s853_s30), 7  ;;  %v347_v0 = vld [vmem:[#allocation6] sm:$0xff] (!%p1690_p9)  ;;  %v348_v1 = vld [vmem:[#allocation6 + $0x8] sm:$0xff] (!%p1690_p9)  ;;  %v349_v2 = vld [vmem:[#allocation6 + $0x10] sm:$0xff] (!%p1690_p9)  ;;  %v1254_v3 = vmov (!%p1690_p9), 0.0|0.0   ;;  %vm1255_vm0 = vmmov (!%p1690_p9), 0   ;;  %v454_v35 = vlaneseq (!%p1690_p9) }
  0x7e   : > { %s339_s8 = scalar_lea.vmem %s1658_s5, %s1706_s30  ;;  %345 = sbr.rel (%p1690_p9) target bundleno = 399 (0x18f), region = 60  ;;  %893 = vmatprep.subr.bf16.mxu0 (!%p1690_p9), %v1254_v3  ;;  %v894_v4 = vpack.c.bf16 (!%p1690_p9), %v348_v1, %v347_v0  ;;  %v350_v5 = vld [vmem:[#allocation6 + $0x18] sm:$0xff] (!%p1690_p9)  ;;  %v1256_v6 = vmov (!%p1690_p9), 0.0   ;;  %v351_v8 = vld [vmem:[#allocation6 + $0x20] sm:$0xff] (!%p1690_p9)  ;;  %v352_v9 = vld [vmem:[#allocation6 + $0x28] sm:$0xff] (!%p1690_p9)  ;;  %vm355_vm1 = vcmask (!%p1690_p9), 523264  }
  0x7f   : > { %890 = vmatprep.mubr.msk.f32.mxu0 (!%p1690_p9), %vm1255_vm0, %v1256_v6  ;;  %v897_v7 = vpack.c.bf16 (!%p1690_p9), %v350_v5, %v349_v2  ;;  %v900_v10 = vpack.c.bf16 (!%p1690_p9), %v352_v9, %v351_v8  ;;  %v353_v11 = vld [vmem:[#allocation6 + $0x30] sm:$0xff] (!%p1690_p9)  ;;  %v354_v12 = vld [vmem:[#allocation6 + $0x38] sm:$0xff] (!%p1690_p9)  ;;  %v455_v36 = vshrl.u32 (!%p1690_p9), %v454_v35, 7 }
  0x80   : > { %895 = vmatpush3.bf16.msra.mxu0 (!%p1690_p9), %v894_v4  ;;  %v903_v13 = vpack.c.bf16 (!%p1690_p9), %v354_v12, %v353_v11  ;;  %v346_v14 = vld [vmem:[#allocation3] sm:$0xff] (!%p1690_p9)  ;;  %v446_v37 = vld [vmem:[%s1655_s2] sm:$0x1] (!%p1690_p9) }
  0x81   : > { %896 = vmatprep.subr.bf16.mxu0 (!%p1690_p9), %v1254_v3  ;;  %v456_v38 = vsub.s32 (!%p1690_p9), 0, %v455_v36  ;;  %v447_v41 = vld [vmem:[%s1656_s3] sm:$0x1] (!%p1690_p9) }
  0x84   : > { %898 = vmatpush3.bf16.msra.mxu0 (!%p1690_p9), %v897_v7 }
  0x85   : > { %899 = vmatprep.subr.bf16.mxu0 %v1254_v3 }
  0x88   : > { %901 = vmatpush3.bf16.msra.mxu0 %v900_v10 }
  0x89   : > { %902 = vmatprep.subr.bf16.mxu0 %v1254_v3 }
  0x8c   : > { %904 = vmatpush3.bf16.msra.mxu0 %v903_v13 }
  0x8f   : > { %891 = vmatmul.mubr.msk.f32.vlgmr.msra.gmra.mrb[0].mxu0 %vm355_vm1, %v346_v14 }
 0x162   : > { %v425_v15 = vpop.f32.mrb[0].mxu0 }
 0x163   : > { %v429_v16 = vrot.slane %v425_v15, 4  ;;  %v435_v17 = vmul.f32 %v425_v15, %v425_v15  ;;  %v892_v18 = vpop.f32.mrb[1].mxu0 }
 0x165   : > { %v430_v19 = vadd.f32 %v429_v16, %v425_v15  ;;  %v436_v20 = vrot.slane %v435_v17, 4 }
 0x167   : > { %v431_v21 = vrot.slane %v430_v19, 2  ;;  %v437_v22 = vadd.f32 %v436_v20, %v435_v17 }
 0x169   : > { %v432_v23 = vadd.f32 %v431_v21, %v430_v19  ;;  %v438_v24 = vrot.slane %v437_v22, 2 }
 0x16b   : > { %v433_v25 = vrot.slane %v432_v23, 1  ;;  %v439_v26 = vadd.f32 %v438_v24, %v437_v22 }
 0x16d   : > { %v434_v27 = vadd.f32 %v433_v25, %v432_v23  ;;  %v440_v28 = vrot.slane %v439_v26, 1 }
 0x16f   : > { %v441_v29 = vadd.f32 %v440_v28, %v439_v26  ;;  %v442_v30 = vmul.f32 0.125, %v434_v27 }
 0x171   : > { %v443_v31 = vmul.f32 0.125, %v441_v29  ;;  %v444_v32 = vmul.f32 %v442_v30, %v442_v30 }
 0x173   : > { %v445_v33 = vsub.f32 %v443_v31, %v444_v32 }
 0x175   : > { %v448_v34 = vadd.f32 1e-05, %v445_v33 }
 0x177   : > { %1052 = vrsqrt.f32 %v448_v34 }
 0x181   : > { %v1053_v39 = vpop.eup %1052 }
 0x182   : > { %v450_v40 = vmul.f32 %v1053_v39, %v446_v37 }
 0x184   : > { %v451_v42 = vmul.f32 %v450_v40, %v442_v30  ;;  %v457_v43 = vrot.slane %v450_v40, %v456_v38 }
 0x186   : > { %v452_v44 = vsub.f32 %v447_v41, %v451_v42  ;;  %v459_v45 = vmul.f32 %v457_v43, %v425_v15 }
 0x188   : > { %v464_v46 = vrot.slane %v452_v44, %v456_v38 }
 0x18a   : > { %v466_v47 = vadd.f32 %v464_v46, %v459_v45 }
 0x18c   : > { %v467_v48 = vmax.f32 %v466_v47, 0.0 }
 0x18e   : > { %468 = vst [vmem:[#allocation2] sm:$0xff] %v467_v48  ;;  %469 = vst [vmem:[#allocation9] sm:$0xff] %v467_v48 }
 0x18f PF: > { %v472_v49 = vld [vmem:[%s1485_s18 + $0x8] sm:$0xff]  ;;  %v474_v51 = vld [vmem:[%s1485_s18 + $0x18] sm:$0xff]  ;;  %v471_v54 = vld [vmem:[%s1485_s18] sm:$0xff]  ;;  %v1257_v56 = vmov 0.0   ;;  %s1258_s16 = smov [#allocation9]   ;;  %p1691_p0 = scmp.eq.s32.totalorder %s1321_s28, 1 }
 0x190   : > { %v476_v50 = vld [vmem:[%s1485_s18 + $0x28] sm:$0xff]  ;;  %v478_v53 = vld [vmem:[%s1485_s18 + $0x38] sm:$0xff]  ;;  %v475_v55 = vld [vmem:[%s1485_s18 + $0x20] sm:$0xff]  ;;  %621 = vmatprep.mubr.f32.mxu0 %v1257_v56  ;;  %692 = vmatprep.mubr.f32.mxu1 %v1257_v56  ;;  %s715_s20 = sshll.u32 %s1258_s16, 4  ;;  %s716_s20 = int_to_ptr.vmem [resolvable:$true] %s715_s20 }
 0x191   : > { %v905_v52 = vpack.c.bf16 %v476_v50, %v472_v49  ;;  %v937_v57 = vpack.c.bf16 %v478_v53, %v474_v51  ;;  %v907_v58 = vpack.c.bf16 %v475_v55, %v471_v54  ;;  %v473_v59 = vld [vmem:[%s1485_s18 + $0x10] sm:$0xff]  ;;  %v480_v61 = vld [vmem:[%s1485_s18 + $0x48] sm:$0xff]  ;;  %v482_v0 = vld [vmem:[%s1485_s18 + $0x58] sm:$0xff]  ;;  %s1140_s22 = scalar_lea.vmem %s716_s20, 128  ;;  %p1147_p13 = scmp.lt.s32.totalorder %s716_s20, %s716_s20 }
 0x192   : > { %v477_v60 = vld [vmem:[%s1485_s18 + $0x30] sm:$0xff]  ;;  %v484_v63 = vld [vmem:[%s1485_s18 + $0x68] sm:$0xff]  ;;  %v486_v1 = vld [vmem:[%s1485_s18 + $0x78] sm:$0xff]  ;;  %p1141_p10 = scmp.ne.s32.totalorder %s716_s20, %s1140_s22  ;;  %p1148_p1 = scmp.lt.s32.totalorder %s1140_s22, %s1140_s22 }
 0x193   : > { %906 = vmatprep.subr.bf16.mxu0 %v905_v52  ;;  %v939_v62 = vpack.c.bf16 %v477_v60, %v473_v59  ;;  %938 = vmatprep.subr.bf16.mxu1 %v937_v57  ;;  %v909_v2 = vpack.c.bf16 %v484_v63, %v480_v61  ;;  %v941_v3 = vpack.c.bf16 %v486_v1, %v482_v0  ;;  %v479_v4 = vld [vmem:[%s1485_s18 + $0x40] sm:$0xff]  ;;  %v481_v6 = vld [vmem:[%s1485_s18 + $0x50] sm:$0xff]  ;;  %v488_v9 = vld [vmem:[%s1485_s18 + $0x88] sm:$0xff] }
 0x194   : > { %908 = vmatpush1.bf16.msra.mxu0 %v907_v58  ;;  %v483_v5 = vld [vmem:[%s1485_s18 + $0x60] sm:$0xff]  ;;  %v485_v8 = vld [vmem:[%s1485_s18 + $0x70] sm:$0xff]  ;;  %v492_v10 = vld [vmem:[%s1485_s18 + $0xa8] sm:$0xff]  ;;  %p1142_p6 = pnand %p1141_p10, %p1691_p0  ;;  %p1149_p2 = por %p1148_p1, %p1147_p13 }
 0x195   : > { %940 = vmatpush1.bf16.msra.mxu1 %v939_v62  ;;  %v911_v7 = vpack.c.bf16 %v483_v5, %v479_v4  ;;  %910 = vmatprep.subr.bf16.mxu0 %v909_v2  ;;  %v943_v11 = vpack.c.bf16 %v485_v8, %v481_v6  ;;  %v913_v12 = vpack.c.bf16 %v492_v10, %v488_v9  ;;  %v490_v13 = vld [vmem:[%s1485_s18 + $0x98] sm:$0xff]  ;;  %v487_v15 = vld [vmem:[%s1485_s18 + $0x80] sm:$0xff]  ;;  %v489_v18 = vld [vmem:[%s1485_s18 + $0x90] sm:$0xff] }
 0x196   : > { %942 = vmatprep.subr.bf16.mxu1 %v941_v3  ;;  %v494_v14 = vld [vmem:[%s1485_s18 + $0xb8] sm:$0xff]  ;;  %v491_v17 = vld [vmem:[%s1485_s18 + $0xa0] sm:$0xff]  ;;  %v493_v19 = vld [vmem:[%s1485_s18 + $0xb0] sm:$0xff]  ;;  %p1143_p11 = pneg %p1142_p6 }
 0x197   : > { %v945_v16 = vpack.c.bf16 %v494_v14, %v490_v13  ;;  %v915_v20 = vpack.c.bf16 %v491_v17, %v487_v15  ;;  %v496_v21 = vld [vmem:[%s1485_s18 + $0xc8] sm:$0xff]  ;;  %v498_v23 = vld [vmem:[%s1485_s18 + $0xd8] sm:$0xff]  ;;  %v947_v24 = vpack.c.bf16 %v493_v19, %v489_v18  ;;  %v495_v27 = vld [vmem:[%s1485_s18 + $0xc0] sm:$0xff] }
 0x198   : > { %912 = vmatpush1.bf16.msra.mxu0 %v911_v7  ;;  %v500_v22 = vld [vmem:[%s1485_s18 + $0xe8] sm:$0xff]  ;;  %v502_v26 = vld [vmem:[%s1485_s18 + $0xf8] sm:$0xff]  ;;  %v499_v28 = vld [vmem:[%s1485_s18 + $0xe0] sm:$0xff]  ;;  %p1150_p12 = pnand %p1149_p2, %p1143_p11 }
 0x199   : > { %944 = vmatpush1.bf16.msra.mxu1 %v943_v11  ;;  %914 = vmatprep.subr.bf16.mxu0 %v913_v12  ;;  %v917_v25 = vpack.c.bf16 %v500_v22, %v496_v21  ;;  %v949_v29 = vpack.c.bf16 %v502_v26, %v498_v23  ;;  %v497_v30 = vld [vmem:[%s1485_s18 + $0xd0] sm:$0xff]  ;;  %v504_v32 = vld [vmem:[%s1485_s18 + $0x108] sm:$0xff]  ;;  %v506_v34 = vld [vmem:[%s1485_s18 + $0x118] sm:$0xff]  ;;  %v919_v36 = vpack.c.bf16 %v499_v28, %v495_v27 }
 0x19a   : > { %946 = vmatprep.subr.bf16.mxu1 %v945_v16  ;;  %v501_v31 = vld [vmem:[%s1485_s18 + $0xf0] sm:$0xff]  ;;  %v508_v33 = vld [vmem:[%s1485_s18 + $0x128] sm:$0xff]  ;;  %v510_v35 = vld [vmem:[%s1485_s18 + $0x138] sm:$0xff] }
 0x19b   : > { %v951_v37 = vpack.c.bf16 %v501_v31, %v497_v30  ;;  %v921_v38 = vpack.c.bf16 %v508_v33, %v504_v32  ;;  %v503_v39 = vld [vmem:[%s1485_s18 + $0x100] sm:$0xff]  ;;  %v505_v41 = vld [vmem:[%s1485_s18 + $0x110] sm:$0xff]  ;;  %v953_v42 = vpack.c.bf16 %v510_v35, %v506_v34  ;;  %v512_v44 = vld [vmem:[%s1485_s18 + $0x148] sm:$0xff] }
 0x19c   : > { %916 = vmatpush1.bf16.msra.mxu0 %v915_v20  ;;  %v507_v40 = vld [vmem:[%s1485_s18 + $0x120] sm:$0xff]  ;;  %v509_v43 = vld [vmem:[%s1485_s18 + $0x130] sm:$0xff]  ;;  %v516_v45 = vld [vmem:[%s1485_s18 + $0x168] sm:$0xff] }
 0x19d   : > { %948 = vmatpush1.bf16.msra.mxu1 %v947_v24  ;;  %918 = vmatprep.subr.bf16.mxu0 %v917_v25  ;;  %v514_v46 = vld [vmem:[%s1485_s18 + $0x158] sm:$0xff]  ;;  %v923_v48 = vpack.c.bf16 %v507_v40, %v503_v39  ;;  %v955_v49 = vpack.c.bf16 %v509_v43, %v505_v41  ;;  %v925_v50 = vpack.c.bf16 %v516_v45, %v512_v44  ;;  %v511_v51 = vld [vmem:[%s1485_s18 + $0x140] sm:$0xff]  ;;  %v513_v53 = vld [vmem:[%s1485_s18 + $0x150] sm:$0xff] }
 0x19e   : > { %950 = vmatprep.subr.bf16.mxu1 %v949_v29  ;;  %v518_v47 = vld [vmem:[%s1485_s18 + $0x178] sm:$0xff]  ;;  %v515_v52 = vld [vmem:[%s1485_s18 + $0x160] sm:$0xff]  ;;  %v517_v55 = vld [vmem:[%s1485_s18 + $0x170] sm:$0xff] }
 0x19f   : > { %v957_v54 = vpack.c.bf16 %v518_v47, %v514_v46  ;;  %v520_v56 = vld [vmem:[%s1485_s18 + $0x188] sm:$0xff]  ;;  %v522_v58 = vld [vmem:[%s1485_s18 + $0x198] sm:$0xff]  ;;  %v927_v60 = vpack.c.bf16 %v515_v52, %v511_v51  ;;  %v959_v61 = vpack.c.bf16 %v517_v55, %v513_v53  ;;  %v519_v63 = vld [vmem:[%s1485_s18 + $0x180] sm:$0xff] }
 0x1a0   : > { %920 = vmatpush1.bf16.msra.mxu0 %v919_v36  ;;  %v524_v57 = vld [vmem:[%s1485_s18 + $0x1a8] sm:$0xff]  ;;  %v526_v59 = vld [vmem:[%s1485_s18 + $0x1b8] sm:$0xff]  ;;  %v523_v0 = vld [vmem:[%s1485_s18 + $0x1a0] sm:$0xff] }
 0x1a1   : > { %952 = vmatpush1.bf16.msra.mxu1 %v951_v37  ;;  %922 = vmatprep.subr.bf16.mxu0 %v921_v38  ;;  %v929_v62 = vpack.c.bf16 %v524_v57, %v520_v56  ;;  %v521_v1 = vld [vmem:[%s1485_s18 + $0x190] sm:$0xff]  ;;  %v961_v2 = vpack.c.bf16 %v526_v59, %v522_v58  ;;  %v528_v4 = vld [vmem:[%s1485_s18 + $0x1c8] sm:$0xff]  ;;  %v530_v6 = vld [vmem:[%s1485_s18 + $0x1d8] sm:$0xff]  ;;  %v931_v8 = vpack.c.bf16 %v523_v0, %v519_v63 }
 0x1a2   : > { %954 = vmatprep.subr.bf16.mxu1 %v953_v42  ;;  %v525_v3 = vld [vmem:[%s1485_s18 + $0x1b0] sm:$0xff]  ;;  %v532_v5 = vld [vmem:[%s1485_s18 + $0x1e8] sm:$0xff]  ;;  %v534_v7 = vld [vmem:[%s1485_s18 + $0x1f8] sm:$0xff] }
 0x1a3   : > { %v963_v9 = vpack.c.bf16 %v525_v3, %v521_v1  ;;  %v933_v10 = vpack.c.bf16 %v532_v5, %v528_v4  ;;  %v527_v11 = vld [vmem:[%s1485_s18 + $0x1c0] sm:$0xff]  ;;  %v965_v13 = vpack.c.bf16 %v534_v7, %v530_v6  ;;  %v529_v14 = vld [vmem:[%s1485_s18 + $0x1d0] sm:$0xff] }
 0x1a4   : > { %924 = vmatpush1.bf16.msra.mxu0 %v923_v48  ;;  %v531_v12 = vld [vmem:[%s1485_s18 + $0x1e0] sm:$0xff]  ;;  %v533_v15 = vld [vmem:[%s1485_s18 + $0x1f0] sm:$0xff] }
 0x1a5   : > { %956 = vmatpush1.bf16.msra.mxu1 %v955_v49  ;;  %926 = vmatprep.subr.bf16.mxu0 %v925_v50  ;;  %v935_v16 = vpack.c.bf16 %v531_v12, %v527_v11  ;;  %v967_v17 = vpack.c.bf16 %v533_v15, %v529_v14  ;;  %v470_v18 = vld [vmem:[#allocation2] sm:$0xff] }
 0x1a6   : > { %958 = vmatprep.subr.bf16.mxu1 %v957_v54 }
 0x1a8   : > { %928 = vmatpush1.bf16.msra.mxu0 %v927_v60 }
 0x1a9   : > { %960 = vmatpush1.bf16.msra.mxu1 %v959_v61  ;;  %930 = vmatprep.subr.bf16.mxu0 %v929_v62 }
 0x1aa   : > { %962 = vmatprep.subr.bf16.mxu1 %v961_v2 }
 0x1ac   : > { %932 = vmatpush1.bf16.msra.mxu0 %v931_v8 }
 0x1ad   : > { %964 = vmatpush1.bf16.msra.mxu1 %v963_v9  ;;  %934 = vmatprep.subr.bf16.mxu0 %v933_v10 }
 0x1ae   : > { %966 = vmatprep.subr.bf16.mxu1 %v965_v13 }
 0x1b0   : > { %936 = vmatpush1.bf16.msra.mxu0 %v935_v16 }
 0x1b1   : > { %968 = vmatpush1.bf16.msra.mxu1 %v967_v17 }
 0x1b3   : > { %622 = vmatmul.mubr.f32.vlgmr.msra.gmra.mrb[0].mxu0 %v470_v18 }
 0x1b4   : > { %693 = vmatmul.mubr.f32.vlgmr.msra.gmra.mrb[0].mxu1 %v470_v18 }
 0x1b5   : > { %1153 = shalt.err (!%p1150_p12)
}
 0x1b6   : > { %s1154_s17 = scalar_lea.hbm %s1659_s6, 128  ;;  %p1692_p4 = pmov %p1691_p0 }
 0x1b7   : > { %p1155_p3 = scmp.ne.s32.totalorder %s1659_s6, %s1154_s17  ;;  %p1160_p8 = scmp.lt.u32.totalorder %s1154_s17, %s1659_s6 }
 0x1b9   : > { %p1156_p5 = pnand %p1155_p3, %p1692_p4 }
 0x1bb   : > { %p1157_p7 = pneg %p1156_p5 }
 0x1bd   : > { %p1162_p9 = pnand %p1160_p8, %p1157_p7 }
 0x1bf   : > { %1165 = shalt.err (!%p1162_p9)
}
 0x1c0   : > { %p1693_p10 = pmov %p1691_p0  ;;  %v537_v19 = vlaneseq  ;;  %v535_v22 = vld [vmem:[%s339_s8] sm:$0xf]  ;;  %s864_s16 = sshll.u32 %s1321_s28, 9 }
 0x1c1   : > { %s1602_s22 = scalar_lea.hbm %s1660_s7, %s864_s16  ;;  %s704_s19 = scalar_lea.sflag [#allocation11], %s1482_s14 }
 0x1c2   : > { %980 = dma.vmem_to_hbm [thread:$0]  (%p1693_p10), %s716_s20, 128, %s1659_s6, [#allocation5]   ;;  %v538_v20 = vshrl.u32 %v537_v19, 7 }
 0x1c3   : > { %s729_s20 = sshll.u32 %s1499_s0, 4  ;;  %p1694_p6 = scmp.ne.s32.totalorder %s1675_s13, 0  ;;  %s1604_s20 = int_to_ptr.vmem [resolvable:$true] %s729_s20 }
 0x1c4   : > { %v539_v21 = vsub.s32 0, %v538_v20  ;;  %v547_v23 = vsub.s32 2, %v538_v20  ;;  %v543_v24 = vsub.s32 1, %v538_v20  ;;  %v551_v25 = vsub.s32 3, %v538_v20  ;;  %s1166_s15 = scalar_lea.vmem %s1604_s20, 512  ;;  %s1259_s17 = smov [#allocation10]  }
 0x1c5   : > { %p1167_p0 = scmp.ne.s32.totalorder %s1604_s20, %s1166_s15  ;;  %s1170_s18 = sshll.u32 %s1259_s17, 4  ;;  %s1171_s18 = int_to_ptr.vmem [resolvable:$false] %s1170_s18 }
 0x1c6   : > { %v540_v26 = vrot.slane %v535_v22, %v539_v21  ;;  %v548_v27 = vrot.slane %v535_v22, %v547_v23  ;;  %v544_v28 = vrot.slane %v535_v22, %v543_v24  ;;  %v552_v29 = vrot.slane %v535_v22, %v551_v25  ;;  %s1172_s21 = scalar_lea.vmem %s1171_s18, 1024  ;;  %p1173_p1 = scmp.lt.s32.totalorder %s1604_s20, %s1171_s18 }
 0x1c7   : > { %p1168_p11 = pnand %p1167_p0, %p1694_p6  ;;  %p1174_p2 = scmp.lt.s32.totalorder %s1172_s21, %s1166_s15 }
 0x1c9   : > { %p1169_p13 = pneg %p1168_p11  ;;  %p1175_p12 = por %p1174_p2, %p1173_p1 }
 0x1cb   : > { %p1176_p3 = pnand %p1175_p12, %p1169_p13 }
 0x286   : > { %v623_v30 = vpop.f32.mrb[0].mxu0 }
 0x287   : > { %v624_v31 = vadd.f32 %v623_v30, %v540_v26  ;;  %v694_v32 = vpop.f32.mrb[0].mxu1  ;;  %v625_v33 = vpop.f32.mrb[1].mxu0 }
 0x288   : > { %v695_v34 = vadd.f32 %v694_v32, %v548_v27  ;;  %v626_v35 = vadd.f32 %v625_v33, %v544_v28  ;;  %v696_v36 = vpop.f32.mrb[1].mxu1 }
 0x289   : > { %699 = vst [vmem:[%s1499_s0] sm:$0xff] %v624_v31  ;;  %v697_v37 = vadd.f32 %v696_v36, %v552_v29 }
 0x28a   : > { %701 = vst [vmem:[%s1499_s0 + $0x10] sm:$0xff] %v695_v34  ;;  %700 = vst [vmem:[%s1499_s0 + $0x8] sm:$0xff] %v626_v35 }
 0x28b   : > { %702 = vst [vmem:[%s1499_s0 + $0x18] sm:$0xff] %v697_v37 }
 0x28c   : > { %1179 = shalt.err (!%p1176_p3)
}
 0x28d   : > { %s1180_s14 = scalar_lea.hbm %s1602_s22, 512  ;;  %s1184_s23 = scalar_lea.hbm %s1660_s7, 1024 }
 0x28e   : > { %p1181_p4 = scmp.ne.s32.totalorder %s1602_s22, %s1180_s14  ;;  %p1185_p8 = scmp.lt.u32.totalorder %s1602_s22, %s1660_s7 }
 0x28f   : > { %p1186_p9 = scmp.lt.u32.totalorder %s1184_s23, %s1180_s14  ;;  %p1188_p0 = scmp.lt.u32.totalorder %s1180_s14, %s1602_s22 }
 0x290   : > { %p1182_p5 = pnand %p1181_p4, %p1694_p6 }
 0x291   : > { %p1187_p10 = por %p1186_p9, %p1185_p8 }
 0x292   : > { %p1183_p7 = pneg %p1182_p5 }
 0x293   : > { %p1189_p11 = por %p1188_p0, %p1187_p10 }
 0x295   : > { %p1190_p13 = pnand %p1189_p11, %p1183_p7 }
 0x297   : > { %1193 = shalt.err (!%p1190_p13)
}
 0x298   : > { %981 = dma.vmem_to_hbm [thread:$0]  (%p1694_p6), %s1604_s20, 512, %s1602_s22, %s704_s19  }
 0x299   : > { %p1695_p1 = scmp.eq.s32.totalorder %s1321_s28, 1 }
 0x29b   : > { %1223 = dma.done.wait (%p1695_p1), [#allocation5], 128   ;;  %p1696_p2 = pmov %p1695_p1 }
 0x29d   : > { %1225 = vsyncadd (%p1696_p2), [#allocation5], 4294967168 }
 0x29e PF: > { %s1697_s9 = sld [smem:[#allocation19_spill]]  ;;  %s745_s11 = sand.u32 1, %s1232_s24  }
 0x29f   : > { %p1699_p3 = scmp.ge.s32.totalorder %s1244_s27, 2  ;;  %s746_s16 = scalar_lea.sflag [#allocation11], %s745_s11 }
 0x2a4   : > { %p1698_p12 = scmp.ne.s32.totalorder %s1697_s9, 0 }
 0x2a6   : > { %p997_p4 = pnand %p1699_p3, %p1698_p12 }
 0x2a8   : > { %1227 = dma.done.wait (!%p997_p4), %s746_s16, 512  }
 0x2a9   : > { %1229 = vsyncadd (!%p997_p4), %s746_s16, 4294966784  ;;  %s1700_s27 = sld [smem:[#allocation17_spill]]  ;;  %s1701_s13 = sld [smem:[#allocation18_spill]] }
 0x2aa   : > { %s1702_s24 = smov %s1236_s25  ;;  %s1703_s25 = smov %s1240_s26 }
 0x2af   : > { %p21_p6 = scmp.ge.s32.totalorder %s1700_s27, 4   ;;  %s1704_s26 = smov %s1701_s13 }
 0x2b1   :  { %23 = sbr.rel (!%p21_p6) target bundleno = 8 (0x8), region = 112 }
 0x2b8   :  { %751 = vsyncpa [#allocation4], 1 }
 0x2b9   :  { %753 = vsyncpa [#allocation4 + $0x1], 1 }
 0x2ba   :  { %754 = vsyncpa [#allocation7], 1 }
 0x2bb   :  { %755 = vsyncpa [#allocation5], 1 }
 0x2bc   :  { %757 = vsyncpa [#allocation5 + $0x1], 1 }
 0x2bd   :  { %758 = vsyncpa [#allocation11], 1 }
 0x2be   :  { %760 = vsyncpa [#allocation11 + $0x1], 1 }

</bundles_post_ra>
